<compile_context>
chip_gen: v7x
topology: tpu7x:2x2x1
jax: 0.10.0
libtpu: 0.0.40
codegen_flags: <defaults>
</compile_context>

<pallas_src>
import jax
import jax.numpy as jnp
from jax.experimental import pallas as pl
from jax.experimental.pallas import tpu as pltpu  # noqa: F401  (kept for TPU-specific extensions)

# ----------------------------- configuration -----------------------------
B = 8                        # batch size (BatchNorm needs B > 1; 8 fills the f32 sublanes)
C, H, W = 4, 16, 16
IN_FEAT = C * H * W          # 1024 flattened image features
DATA_HID = 128
DATA_EMB_DIM = 128
LABEL_EMB_DIM = 64
LATENT_DIM = 128
N_LABELS = 16
EMB_DIM = DATA_EMB_DIM + LABEL_EMB_DIM     # 192
BN_EPS = 1e-5


# ------------------------------- fused kernel -------------------------------
def mlc_encoder_kernel(
    x_ref, y_ref,
    dw1_ref, db1_ref, dw2_ref, db2_ref,                       # data_encoder (stand-in)
    lw1_ref, lb1_ref, lw2_ref, lb2_ref, lw3_ref, lb3_ref,     # label_encoder (build_mlp)
    lw4_ref, lb4_ref,
    gx_ref, bx_ref, gy_ref, by_ref,                           # BatchNorm affine, split per slab
    pwx_ref, pwy_ref, pb_ref,                                 # pred_layer, split per slab
    emb_ref, yp_ref,                                          # outputs
):
    f32, bf16 = jnp.float32, jnp.bfloat16
    inv_b = jnp.float32(1.0 / x_ref.shape[0])

    # --- data encoder: Flatten -> Linear -> ReLU -> Linear (bf16 MXU, f32 acc) ---
    x = x_ref[...].astype(bf16)                               # cast in-kernel (no wrapper HLO)
    h = jnp.dot(x, dw1_ref[...], preferred_element_type=f32) + db1_ref[...]
    h = jnp.maximum(h, 0.0)
    x_emb = jnp.dot(h.astype(bf16), dw2_ref[...], preferred_element_type=f32) + db2_ref[...]

    # --- label encoder: 4 Linear layers, ReLU between (Dropout inert) ------------
    y = y_ref[...].astype(bf16)                               # 0/1 labels are exact in bf16
    h = jnp.maximum(jnp.dot(y, lw1_ref[...], preferred_element_type=f32)
                    + lb1_ref[...], 0.0)
    h = jnp.maximum(jnp.dot(h.astype(bf16), lw2_ref[...], preferred_element_type=f32)
                    + lb2_ref[...], 0.0)
    h = jnp.maximum(jnp.dot(h.astype(bf16), lw3_ref[...], preferred_element_type=f32)
                    + lb3_ref[...], 0.0)
    y_emb = jnp.dot(h.astype(bf16), lw4_ref[...], preferred_element_type=f32) + lb4_ref[...]

    # --- BatchNorm1d with global batch statistics, per slab (no concat needed) ---
    # Two-pass: mean, then centered sum of squares (biased variance, eps=1e-5).
    mx = jnp.sum(x_emb, axis=0, keepdims=True) * inv_b
    vx = jnp.sum((x_emb - mx) * (x_emb - mx), axis=0, keepdims=True) * inv_b
    xn = (x_emb - mx) * jax.lax.rsqrt(vx + BN_EPS) * gx_ref[...] + bx_ref[...]

    my = jnp.sum(y_emb, axis=0, keepdims=True) * inv_b
    vy = jnp.sum((y_emb - my) * (y_emb - my), axis=0, keepdims=True) * inv_b
    yn = (y_emb - my) * jax.lax.rsqrt(vy + BN_EPS) * gy_ref[...] + by_ref[...]

    # emb = cat([x_emb_norm, y_emb_norm], -1), written as two lane slabs.
    emb_ref[:, 0:DATA_EMB_DIM] = xn
    emb_ref[:, DATA_EMB_DIM:EMB_DIM] = yn

    # --- pred head: sigmoid(emb @ pw + pb), matmul split across the two slabs ---
    logits = (jnp.dot(xn.astype(bf16), pwx_ref[...], preferred_element_type=f32)
              + jnp.dot(yn.astype(bf16), pwy_ref[...], preferred_element_type=f32)
              + pb_ref[...])
    yp_ref[...] = jax.nn.sigmoid(logits)


# --------------------------------- wrapper ----------------------------------
def mlc_encoder_forward(x_nchw, y, kp):
    b = x_nchw.shape[0]
    # The only wrapper op: nn.Flatten (row-major, contiguous -> free in XLA).
    x_flat = x_nchw.reshape(b, -1)

    weights = (kp["dw1"], kp["db1"], kp["dw2"], kp["db2"],
               kp["lw1"], kp["lb1"], kp["lw2"], kp["lb2"],
               kp["lw3"], kp["lb3"], kp["lw4"], kp["lb4"],
               kp["gamma_x"], kp["beta_x"], kp["gamma_y"], kp["beta_y"],
               kp["pw_x"], kp["pw_y"], kp["pb"])

    flops = 2 * b * (IN_FEAT * DATA_HID + DATA_HID * DATA_EMB_DIM
                     + N_LABELS * LATENT_DIM + 2 * LATENT_DIM * LATENT_DIM
                     + LATENT_DIM * LABEL_EMB_DIM
                     + DATA_EMB_DIM * N_LABELS + LABEL_EMB_DIM * N_LABELS)
    bytes_accessed = (int(x_flat.size) * x_flat.dtype.itemsize
                      + int(y.size) * y.dtype.itemsize
                      + sum(int(w.size) * w.dtype.itemsize for w in weights)
                      + b * EMB_DIM * 4 + b * N_LABELS * 4)

    # Single fused pallas_call: no grid, every operand is a full-array block
    # resident in VMEM (total footprint < 1 MB on all generations).
    emb, y_pred = pl.pallas_call(
        mlc_encoder_kernel,
        out_shape=(jax.ShapeDtypeStruct((b, EMB_DIM), jnp.float32),
                   jax.ShapeDtypeStruct((b, N_LABELS), jnp.float32)),
        cost_estimate=pl.CostEstimate(flops=int(flops),
                                      transcendentals=int(EMB_DIM + b * N_LABELS),
                                      bytes_accessed=int(bytes_accessed)),
    )(x_flat, y, *weights)

    return {"embedding": emb, "y_dist": y_pred}


# --------------------------- parameter init / packing -----------------------
def _linear_params(key, fan_in, fan_out):
    scale = 1.0 / jnp.sqrt(jnp.float32(fan_in))
    w = jax.random.normal(key, (fan_in, fan_out), jnp.float32) * scale
    b = jnp.zeros((1, fan_out), jnp.float32)
    return w, b


def make_params(seed=0):
    """Logical (PyTorch-shaped) f32 parameters; weights stored [in, out]."""
    keys = jax.random.split(jax.random.PRNGKey(seed), 8)
    dw1, db1 = _linear_params(keys[0], IN_FEAT, DATA_HID)
    dw2, db2 = _linear_params(keys[1], DATA_HID, DATA_EMB_DIM)
    lw1, lb1 = _linear_params(keys[2], N_LABELS, LATENT_DIM)
    lw2, lb2 = _linear_params(keys[3], LATENT_DIM, LATENT_DIM)
    lw3, lb3 = _linear_params(keys[4], LATENT_DIM, LATENT_DIM)
    lw4, lb4 = _linear_params(keys[5], LATENT_DIM, LABEL_EMB_DIM)
    pw, pb = _linear_params(keys[6], EMB_DIM, N_LABELS)
    gamma = jnp.ones((1, EMB_DIM), jnp.float32)
    beta = jnp.zeros((1, EMB_DIM), jnp.float32)
    return dict(dw1=dw1, db1=db1, dw2=dw2, db2=db2,
                lw1=lw1, lb1=lb1, lw2=lw2, lb2=lb2,
                lw3=lw3, lb3=lb3, lw4=lw4, lb4=lb4,
                pw=pw, pb=pb, gamma=gamma, beta=beta)


def pack_params(p):
    """Kernel layout: bf16 matmul weights, f32 biases / affine.

    pred_layer weight and the BatchNorm affine are split at the x_emb / y_emb
    slab boundary so the kernel never has to concatenate along the lane axis.
    Done once at setup time (not in the forward hot path).
    """
    bf16 = jnp.bfloat16
    return dict(
        dw1=p["dw1"].astype(bf16), db1=p["db1"],
        dw2=p["dw2"].astype(bf16), db2=p["db2"],
        lw1=p["lw1"].astype(bf16), lb1=p["lb1"],
        lw2=p["lw2"].astype(bf16), lb2=p["lb2"],
        lw3=p["lw3"].astype(bf16), lb3=p["lb3"],
        lw4=p["lw4"].astype(bf16), lb4=p["lb4"],
        gamma_x=p["gamma"][:, :DATA_EMB_DIM], gamma_y=p["gamma"][:, DATA_EMB_DIM:],
        beta_x=p["beta"][:, :DATA_EMB_DIM], beta_y=p["beta"][:, DATA_EMB_DIM:],
        pw_x=p["pw"][:DATA_EMB_DIM].astype(bf16),
        pw_y=p["pw"][DATA_EMB_DIM:].astype(bf16),
        pb=p["pb"],
    )


# --------------------------- pure-JAX reference ------------------------------
def reference_forward(x_nchw, y, kp):
    """Mirrors the kernel math (same bf16 casts) in plain jnp, for validation."""
    f32, bf16 = jnp.float32, jnp.bfloat16
    x = x_nchw.reshape(x_nchw.shape[0], -1).astype(bf16)
    h = jnp.maximum(jnp.dot(x, kp["dw1"], preferred_element_type=f32) + kp["db1"], 0.0)
    x_emb = jnp.dot(h.astype(bf16), kp["dw2"], preferred_element_type=f32) + kp["db2"]
    yb = y.astype(bf16)
    h = jnp.maximum(jnp.dot(yb, kp["lw1"], preferred_element_type=f32) + kp["lb1"], 0.0)
    h = jnp.maximum(jnp.dot(h.astype(bf16), kp["lw2"], preferred_element_type=f32) + kp["lb2"], 0.0)
    h = jnp.maximum(jnp.dot(h.astype(bf16), kp["lw3"], preferred_element_type=f32) + kp["lb3"], 0.0)
    y_emb = jnp.dot(h.astype(bf16), kp["lw4"], preferred_element_type=f32) + kp["lb4"]
    emb = jnp.concatenate([x_emb, y_emb], axis=-1)
    mean = jnp.mean(emb, axis=0, keepdims=True)
    var = jnp.mean((emb - mean) ** 2, axis=0, keepdims=True)
    gamma = jnp.concatenate([kp["gamma_x"], kp["gamma_y"]], axis=-1)
    beta = jnp.concatenate([kp["beta_x"], kp["beta_y"]], axis=-1)
    en = (emb - mean) * jax.lax.rsqrt(var + BN_EPS) * gamma + beta
    pw = jnp.concatenate([kp["pw_x"], kp["pw_y"]], axis=0)
    logits = jnp.dot(en.astype(bf16), pw, preferred_element_type=f32) + kp["pb"]
    return {"embedding": en, "y_dist": jax.nn.sigmoid(logits)}


# ------------------------------------ main -----------------------------------
if __name__ == "__main__":
    key = jax.random.PRNGKey(0)
    kx, ky = jax.random.split(key)
    x = jax.random.normal(kx, (B, C, H, W), jnp.float32)                   # NCHW images
    y = (jax.random.uniform(ky, (B, N_LABELS)) > 0.5).astype(jnp.float32)  # multi-label targets

    kp = pack_params(make_params(seed=0))
    fwd = jax.jit(mlc_encoder_forward)
    out = fwd(x, y, kp)
    jax.block_until_ready(out)

    emb, y_pred = out["embedding"], out["y_dist"]
    assert emb.shape == (B, EMB_DIM)
    assert y_pred.shape == (B, N_LABELS)
    assert bool(jnp.all(jnp.isfinite(emb))) and bool(jnp.all(jnp.isfinite(y_pred)))

    ref = reference_forward(x, y, kp)
    assert bool(jnp.allclose(emb, ref["embedding"], atol=5e-2, rtol=5e-2))
    assert bool(jnp.allclose(y_pred, ref["y_dist"], atol=2e-2, rtol=2e-2))
    print("KERNEL_OK")
</pallas_src>

<mosaic_0001>
module attributes {stable_mosaic.version = 11 : i64} {
  func.func @mlc_encoder_kernel(%arg0: memref<8x1024xf32, #tpu.memory_space<vmem>>, %arg1: memref<8x16xf32, #tpu.memory_space<vmem>>, %arg2: memref<1024x128xbf16, #tpu.memory_space<vmem>>, %arg3: memref<1x128xf32, #tpu.memory_space<vmem>>, %arg4: memref<128x128xbf16, #tpu.memory_space<vmem>>, %arg5: memref<1x128xf32, #tpu.memory_space<vmem>>, %arg6: memref<16x128xbf16, #tpu.memory_space<vmem>>, %arg7: memref<1x128xf32, #tpu.memory_space<vmem>>, %arg8: memref<128x128xbf16, #tpu.memory_space<vmem>>, %arg9: memref<1x128xf32, #tpu.memory_space<vmem>>, %arg10: memref<128x128xbf16, #tpu.memory_space<vmem>>, %arg11: memref<1x128xf32, #tpu.memory_space<vmem>>, %arg12: memref<128x64xbf16, #tpu.memory_space<vmem>>, %arg13: memref<1x64xf32, #tpu.memory_space<vmem>>, %arg14: memref<1x128xf32, #tpu.memory_space<vmem>>, %arg15: memref<1x128xf32, #tpu.memory_space<vmem>>, %arg16: memref<1x64xf32, #tpu.memory_space<vmem>>, %arg17: memref<1x64xf32, #tpu.memory_space<vmem>>, %arg18: memref<128x16xbf16, #tpu.memory_space<vmem>>, %arg19: memref<64x16xbf16, #tpu.memory_space<vmem>>, %arg20: memref<1x16xf32, #tpu.memory_space<vmem>>, %arg21: memref<8x192xf32, #tpu.memory_space<vmem>>, %arg22: memref<8x16xf32, #tpu.memory_space<vmem>>) attributes {dimension_semantics = [], scalar_prefetch = 0 : i64, scratch_operands = 0 : i64, tpu.core_type = #tpu.core_type<tc>} {
    %c0 = arith.constant 0 : index
    %c0_0 = arith.constant 0 : index
    %0 = vector.load %arg0[%c0, %c0_0] : memref<8x1024xf32, #tpu.memory_space<vmem>>, vector<8x1024xf32>
    %1 = arith.truncf %0 : vector<8x1024xf32> to vector<8x1024xbf16>
    %c0_1 = arith.constant 0 : index
    %c0_2 = arith.constant 0 : index
    %2 = vector.load %arg2[%c0_1, %c0_2] : memref<1024x128xbf16, #tpu.memory_space<vmem>>, vector<1024x128xbf16>
    %cst = arith.constant dense<0.000000e+00> : vector<8x128xf32>
    %3 = tpu.matmul %1, %2, %cst {dimension_numbers = #tpu.dot_dimension_numbers<[1], [0], [0], [1], [0, 0, 1, 1], [], []>} : vector<8x1024xbf16>, vector<1024x128xbf16>, vector<8x128xf32> -> vector<8x128xf32>
    %c0_3 = arith.constant 0 : index
    %c0_4 = arith.constant 0 : index
    %4 = vector.load %arg3[%c0_3, %c0_4] : memref<1x128xf32, #tpu.memory_space<vmem>>, vector<1x128xf32>
    %5 = vector.broadcast %4 : vector<1x128xf32> to vector<8x128xf32>
    %6 = arith.addf %3, %5 : vector<8x128xf32>
    %cst_5 = arith.constant 0.000000e+00 : f32
    %7 = vector.broadcast %cst_5 : f32 to vector<8x128xf32>
    %8 = arith.maximumf %6, %7 : vector<8x128xf32>
    %9 = arith.truncf %8 : vector<8x128xf32> to vector<8x128xbf16>
    %c0_6 = arith.constant 0 : index
    %c0_7 = arith.constant 0 : index
    %10 = vector.load %arg4[%c0_6, %c0_7] : memref<128x128xbf16, #tpu.memory_space<vmem>>, vector<128x128xbf16>
    %cst_8 = arith.constant dense<0.000000e+00> : vector<8x128xf32>
    %11 = tpu.matmul %9, %10, %cst_8 {dimension_numbers = #tpu.dot_dimension_numbers<[1], [0], [0], [1], [0, 0, 1, 1], [], []>} : vector<8x128xbf16>, vector<128x128xbf16>, vector<8x128xf32> -> vector<8x128xf32>
    %c0_9 = arith.constant 0 : index
    %c0_10 = arith.constant 0 : index
    %12 = vector.load %arg5[%c0_9, %c0_10] : memref<1x128xf32, #tpu.memory_space<vmem>>, vector<1x128xf32>
    %13 = vector.broadcast %12 : vector<1x128xf32> to vector<8x128xf32>
    %14 = arith.addf %11, %13 : vector<8x128xf32>
    %c0_11 = arith.constant 0 : index
    %c0_12 = arith.constant 0 : index
    %15 = vector.load %arg1[%c0_11, %c0_12] : memref<8x16xf32, #tpu.memory_space<vmem>>, vector<8x16xf32>
    %16 = arith.truncf %15 : vector<8x16xf32> to vector<8x16xbf16>
    %c0_13 = arith.constant 0 : index
    %c0_14 = arith.constant 0 : index
    %17 = vector.load %arg6[%c0_13, %c0_14] : memref<16x128xbf16, #tpu.memory_space<vmem>>, vector<16x128xbf16>
    %cst_15 = arith.constant dense<0.000000e+00> : vector<8x128xf32>
    %18 = tpu.matmul %16, %17, %cst_15 {dimension_numbers = #tpu.dot_dimension_numbers<[1], [0], [0], [1], [0, 0, 1, 1], [], []>} : vector<8x16xbf16>, vector<16x128xbf16>, vector<8x128xf32> -> vector<8x128xf32>
    %c0_16 = arith.constant 0 : index
    %c0_17 = arith.constant 0 : index
    %19 = vector.load %arg7[%c0_16, %c0_17] : memref<1x128xf32, #tpu.memory_space<vmem>>, vector<1x128xf32>
    %20 = vector.broadcast %19 : vector<1x128xf32> to vector<8x128xf32>
    %21 = arith.addf %18, %20 : vector<8x128xf32>
    %cst_18 = arith.constant 0.000000e+00 : f32
    %22 = vector.broadcast %cst_18 : f32 to vector<8x128xf32>
    %23 = arith.maximumf %21, %22 : vector<8x128xf32>
    %24 = arith.truncf %23 : vector<8x128xf32> to vector<8x128xbf16>
    %c0_19 = arith.constant 0 : index
    %c0_20 = arith.constant 0 : index
    %25 = vector.load %arg8[%c0_19, %c0_20] : memref<128x128xbf16, #tpu.memory_space<vmem>>, vector<128x128xbf16>
    %cst_21 = arith.constant dense<0.000000e+00> : vector<8x128xf32>
    %26 = tpu.matmul %24, %25, %cst_21 {dimension_numbers = #tpu.dot_dimension_numbers<[1], [0], [0], [1], [0, 0, 1, 1], [], []>} : vector<8x128xbf16>, vector<128x128xbf16>, vector<8x128xf32> -> vector<8x128xf32>
    %c0_22 = arith.constant 0 : index
    %c0_23 = arith.constant 0 : index
    %27 = vector.load %arg9[%c0_22, %c0_23] : memref<1x128xf32, #tpu.memory_space<vmem>>, vector<1x128xf32>
    %28 = vector.broadcast %27 : vector<1x128xf32> to vector<8x128xf32>
    %29 = arith.addf %26, %28 : vector<8x128xf32>
    %cst_24 = arith.constant 0.000000e+00 : f32
    %30 = vector.broadcast %cst_24 : f32 to vector<8x128xf32>
    %31 = arith.maximumf %29, %30 : vector<8x128xf32>
    %32 = arith.truncf %31 : vector<8x128xf32> to vector<8x128xbf16>
    %c0_25 = arith.constant 0 : index
    %c0_26 = arith.constant 0 : index
    %33 = vector.load %arg10[%c0_25, %c0_26] : memref<128x128xbf16, #tpu.memory_space<vmem>>, vector<128x128xbf16>
    %cst_27 = arith.constant dense<0.000000e+00> : vector<8x128xf32>
    %34 = tpu.matmul %32, %33, %cst_27 {dimension_numbers = #tpu.dot_dimension_numbers<[1], [0], [0], [1], [0, 0, 1, 1], [], []>} : vector<8x128xbf16>, vector<128x128xbf16>, vector<8x128xf32> -> vector<8x128xf32>
    %c0_28 = arith.constant 0 : index
    %c0_29 = arith.constant 0 : index
    %35 = vector.load %arg11[%c0_28, %c0_29] : memref<1x128xf32, #tpu.memory_space<vmem>>, vector<1x128xf32>
    %36 = vector.broadcast %35 : vector<1x128xf32> to vector<8x128xf32>
    %37 = arith.addf %34, %36 : vector<8x128xf32>
    %cst_30 = arith.constant 0.000000e+00 : f32
    %38 = vector.broadcast %cst_30 : f32 to vector<8x128xf32>
    %39 = arith.maximumf %37, %38 : vector<8x128xf32>
    %40 = arith.truncf %39 : vector<8x128xf32> to vector<8x128xbf16>
    %c0_31 = arith.constant 0 : index
    %c0_32 = arith.constant 0 : index
    %41 = vector.load %arg12[%c0_31, %c0_32] : memref<128x64xbf16, #tpu.memory_space<vmem>>, vector<128x64xbf16>
    %cst_33 = arith.constant dense<0.000000e+00> : vector<8x64xf32>
    %42 = tpu.matmul %40, %41, %cst_33 {dimension_numbers = #tpu.dot_dimension_numbers<[1], [0], [0], [1], [0, 0, 1, 1], [], []>} : vector<8x128xbf16>, vector<128x64xbf16>, vector<8x64xf32> -> vector<8x64xf32>
    %c0_34 = arith.constant 0 : index
    %c0_35 = arith.constant 0 : index
    %43 = vector.load %arg13[%c0_34, %c0_35] : memref<1x64xf32, #tpu.memory_space<vmem>>, vector<1x64xf32>
    %44 = vector.broadcast %43 : vector<1x64xf32> to vector<8x64xf32>
    %45 = arith.addf %42, %44 : vector<8x64xf32>
    %cst_36 = arith.constant dense<0.000000e+00> : vector<128xf32>
    %46 = vector.multi_reduction <add>, %14, %cst_36 [0] : vector<8x128xf32> to vector<128xf32>
    %47 = vector.shape_cast %46 : vector<128xf32> to vector<1x128xf32>
    %cst_37 = arith.constant 1.250000e-01 : f32
    %48 = vector.broadcast %cst_37 : f32 to vector<1x128xf32>
    %49 = arith.mulf %47, %48 : vector<1x128xf32>
    %50 = vector.broadcast %49 : vector<1x128xf32> to vector<8x128xf32>
    %51 = arith.subf %14, %50 : vector<8x128xf32>
    %52 = vector.broadcast %49 : vector<1x128xf32> to vector<8x128xf32>
    %53 = arith.subf %14, %52 : vector<8x128xf32>
    %54 = arith.mulf %51, %53 : vector<8x128xf32>
    %cst_38 = arith.constant dense<0.000000e+00> : vector<128xf32>
    %55 = vector.multi_reduction <add>, %54, %cst_38 [0] : vector<8x128xf32> to vector<128xf32>
    %56 = vector.shape_cast %55 : vector<128xf32> to vector<1x128xf32>
    %cst_39 = arith.constant 1.250000e-01 : f32
    %57 = vector.broadcast %cst_39 : f32 to vector<1x128xf32>
    %58 = arith.mulf %56, %57 : vector<1x128xf32>
    %59 = vector.broadcast %49 : vector<1x128xf32> to vector<8x128xf32>
    %60 = arith.subf %14, %59 : vector<8x128xf32>
    %cst_40 = arith.constant 9.99999974E-6 : f32
    %61 = vector.broadcast %cst_40 : f32 to vector<1x128xf32>
    %62 = arith.addf %58, %61 : vector<1x128xf32>
    %63 = math.rsqrt %62 : vector<1x128xf32>
    %64 = vector.broadcast %63 : vector<1x128xf32> to vector<8x128xf32>
    %65 = arith.mulf %60, %64 : vector<8x128xf32>
    %c0_41 = arith.constant 0 : index
    %c0_42 = arith.constant 0 : index
    %66 = vector.load %arg14[%c0_41, %c0_42] : memref<1x128xf32, #tpu.memory_space<vmem>>, vector<1x128xf32>
    %67 = vector.broadcast %66 : vector<1x128xf32> to vector<8x128xf32>
    %68 = arith.mulf %65, %67 : vector<8x128xf32>
    %c0_43 = arith.constant 0 : index
    %c0_44 = arith.constant 0 : index
    %69 = vector.load %arg15[%c0_43, %c0_44] : memref<1x128xf32, #tpu.memory_space<vmem>>, vector<1x128xf32>
    %70 = vector.broadcast %69 : vector<1x128xf32> to vector<8x128xf32>
    %71 = arith.addf %68, %70 : vector<8x128xf32>
    %cst_45 = arith.constant dense<0.000000e+00> : vector<64xf32>
    %72 = vector.multi_reduction <add>, %45, %cst_45 [0] : vector<8x64xf32> to vector<64xf32>
    %73 = vector.shape_cast %72 : vector<64xf32> to vector<1x64xf32>
    %cst_46 = arith.constant 1.250000e-01 : f32
    %74 = vector.broadcast %cst_46 : f32 to vector<1x64xf32>
    %75 = arith.mulf %73, %74 : vector<1x64xf32>
    %76 = vector.broadcast %75 : vector<1x64xf32> to vector<8x64xf32>
    %77 = arith.subf %45, %76 : vector<8x64xf32>
    %78 = vector.broadcast %75 : vector<1x64xf32> to vector<8x64xf32>
    %79 = arith.subf %45, %78 : vector<8x64xf32>
    %80 = arith.mulf %77, %79 : vector<8x64xf32>
    %cst_47 = arith.constant dense<0.000000e+00> : vector<64xf32>
    %81 = vector.multi_reduction <add>, %80, %cst_47 [0] : vector<8x64xf32> to vector<64xf32>
    %82 = vector.shape_cast %81 : vector<64xf32> to vector<1x64xf32>
    %cst_48 = arith.constant 1.250000e-01 : f32
    %83 = vector.broadcast %cst_48 : f32 to vector<1x64xf32>
    %84 = arith.mulf %82, %83 : vector<1x64xf32>
    %85 = vector.broadcast %75 : vector<1x64xf32> to vector<8x64xf32>
    %86 = arith.subf %45, %85 : vector<8x64xf32>
    %cst_49 = arith.constant 9.99999974E-6 : f32
    %87 = vector.broadcast %cst_49 : f32 to vector<1x64xf32>
    %88 = arith.addf %84, %87 : vector<1x64xf32>
    %89 = math.rsqrt %88 : vector<1x64xf32>
    %90 = vector.broadcast %89 : vector<1x64xf32> to vector<8x64xf32>
    %91 = arith.mulf %86, %90 : vector<8x64xf32>
    %c0_50 = arith.constant 0 : index
    %c0_51 = arith.constant 0 : index
    %92 = vector.load %arg16[%c0_50, %c0_51] : memref<1x64xf32, #tpu.memory_space<vmem>>, vector<1x64xf32>
    %93 = vector.broadcast %92 : vector<1x64xf32> to vector<8x64xf32>
    %94 = arith.mulf %91, %93 : vector<8x64xf32>
    %c0_52 = arith.constant 0 : index
    %c0_53 = arith.constant 0 : index
    %95 = vector.load %arg17[%c0_52, %c0_53] : memref<1x64xf32, #tpu.memory_space<vmem>>, vector<1x64xf32>
    %96 = vector.broadcast %95 : vector<1x64xf32> to vector<8x64xf32>
    %97 = arith.addf %94, %96 : vector<8x64xf32>
    %c0_54 = arith.constant 0 : index
    %c0_55 = arith.constant 0 : index
    %98 = vector.load %arg21[%c0_54, %c0_55] : memref<8x192xf32, #tpu.memory_space<vmem>>, vector<8x128xf32>
    tpu.vector_store %arg21[%c0_54, %c0_55], %71 {strides = array<i32>} : memref<8x192xf32, #tpu.memory_space<vmem>>, vector<8x128xf32>,
    %c0_56 = arith.constant 0 : index
    %c128 = arith.constant 128 : index
    %99 = vector.load %arg21[%c0_56, %c128] : memref<8x192xf32, #tpu.memory_space<vmem>>, vector<8x64xf32>
    tpu.vector_store %arg21[%c0_56, %c128], %97 {strides = array<i32>} : memref<8x192xf32, #tpu.memory_space<vmem>>, vector<8x64xf32>,
    %100 = arith.truncf %71 : vector<8x128xf32> to vector<8x128xbf16>
    %c0_57 = arith.constant 0 : index
    %c0_58 = arith.constant 0 : index
    %101 = vector.load %arg18[%c0_57, %c0_58] : memref<128x16xbf16, #tpu.memory_space<vmem>>, vector<128x16xbf16>
    %cst_59 = arith.constant dense<0.000000e+00> : vector<8x16xf32>
    %102 = tpu.matmul %100, %101, %cst_59 {dimension_numbers = #tpu.dot_dimension_numbers<[1], [0], [0], [1], [0, 0, 1, 1], [], []>} : vector<8x128xbf16>, vector<128x16xbf16>, vector<8x16xf32> -> vector<8x16xf32>
    %103 = arith.truncf %97 : vector<8x64xf32> to vector<8x64xbf16>
    %c0_60 = arith.constant 0 : index
    %c0_61 = arith.constant 0 : index
    %104 = vector.load %arg19[%c0_60, %c0_61] : memref<64x16xbf16, #tpu.memory_space<vmem>>, vector<64x16xbf16>
    %cst_62 = arith.constant dense<0.000000e+00> : vector<8x16xf32>
    %105 = tpu.matmul %103, %104, %cst_62 {dimension_numbers = #tpu.dot_dimension_numbers<[1], [0], [0], [1], [0, 0, 1, 1], [], []>} : vector<8x64xbf16>, vector<64x16xbf16>, vector<8x16xf32> -> vector<8x16xf32>
    %106 = arith.addf %102, %105 : vector<8x16xf32>
    %c0_63 = arith.constant 0 : index
    %c0_64 = arith.constant 0 : index
    %107 = vector.load %arg20[%c0_63, %c0_64] : memref<1x16xf32, #tpu.memory_space<vmem>>, vector<1x16xf32>
    %108 = vector.broadcast %107 : vector<1x16xf32> to vector<8x16xf32>
    %109 = arith.addf %106, %108 : vector<8x16xf32>
    %110 = arith.negf %109 : vector<8x16xf32>
    %111 = math.exp %110 : vector<8x16xf32>
    %cst_65 = arith.constant 1.000000e+00 : f32
    %112 = vector.broadcast %cst_65 : f32 to vector<8x16xf32>
    %113 = arith.addf %112, %111 : vector<8x16xf32>
    %114 = arith.divf %112, %113 : vector<8x16xf32>
    %c0_66 = arith.constant 0 : index
    %c0_67 = arith.constant 0 : index
    %115 = vector.load %arg22[%c0_66, %c0_67] : memref<8x16xf32, #tpu.memory_space<vmem>>, vector<8x16xf32>
    tpu.vector_store %arg22[%c0_66, %c0_67], %114 {strides = array<i32>} : memref<8x16xf32, #tpu.memory_space<vmem>>, vector<8x16xf32>,
    return
  }
}

</mosaic_0001>

<bundles_post_ra>
// kernel: mlc_encoder_forward.1
= control target key start
LH: loop header
LB: loop body
LE: loop exit
PB: predicated region body
PF: predicated region fallthrough
CT: control target
= control target key end

     0   :  { %s2730_s0 = inlined_call_operand.vmem [shape: f32[8,1024], index: 0, kind: input, shape index: {}]   ;;  %s2731_s1 = inlined_call_operand.vmem [shape: f32[8,16], index: 1, kind: input, shape index: {}]   ;;  %s2732_s2 = inlined_call_operand.vmem [shape: bf16[1024,128], index: 2, kind: input, shape index: {}]   ;;  %s2733_s3 = inlined_call_operand.vmem [shape: f32[1,128], index: 3, kind: input, shape index: {}]   ;;  %s2734_s4 = inlined_call_operand.vmem [shape: bf16[128,128], index: 4, kind: input, shape index: {}]   ;;  %s2735_s5 = inlined_call_operand.vmem [shape: f32[1,128], index: 5, kind: input, shape index: {}]   ;;  %s2736_s6 = inlined_call_operand.vmem [shape: bf16[16,128], index: 6, kind: input, shape index: {}]   ;;  %s2737_s7 = inlined_call_operand.vmem [shape: f32[1,128], index: 7, kind: input, shape index: {}]   ;;  %s2738_s8 = inlined_call_operand.vmem [shape: bf16[128,128], index: 8, kind: input, shape index: {}]   ;;  %s2739_s9 = inlined_call_operand.vmem [shape: f32[1,128], index: 9, kind: input, shape index: {}]   ;;  %s2740_s10 = inlined_call_operand.vmem [shape: bf16[128,128], index: 10, kind: input, shape index: {}]   ;;  %s2741_s11 = inlined_call_operand.vmem [shape: f32[1,128], index: 11, kind: input, shape index: {}]   ;;  %s2742_s12 = inlined_call_operand.vmem [shape: bf16[128,64], index: 12, kind: input, shape index: {}]   ;;  %s2743_s13 = inlined_call_operand.vmem [shape: f32[1,64], index: 13, kind: input, shape index: {}]   ;;  %s2744_s14 = inlined_call_operand.vmem [shape: f32[1,128], index: 14, kind: input, shape index: {}]   ;;  %s2745_s15 = inlined_call_operand.vmem [shape: f32[1,128], index: 15, kind: input, shape index: {}]   ;;  %s2746_s16 = inlined_call_operand.vmem [shape: f32[1,64], index: 16, kind: input, shape index: {}]   ;;  %s2747_s17 = inlined_call_operand.vmem [shape: f32[1,64], index: 17, kind: input, shape index: {}]   ;;  %s2748_s18 = inlined_call_operand.vmem [shape: bf16[128,16], index: 18, kind: input, shape index: {}]   ;;  %s2749_s19 = inlined_call_operand.vmem [shape: bf16[64,16], index: 19, kind: input, shape index: {}]   ;;  %s2750_s20 = inlined_call_operand.vmem [shape: f32[1,16], index: 20, kind: input, shape index: {}]   ;;  %s2751_s21 = inlined_call_operand.hbm [shape: f32[8,192], index: 21, kind: output, shape index: {0}]   ;;  %s2752_s22 = inlined_call_operand.hbm [shape: f32[8,16], index: 22, kind: output, shape index: {1}]  }
   0x1   :  { %2756 = sst [smem:[#allocation8_spill]] %s2730_s0 }
   0x2   :  { %2757 = sst [smem:[#allocation9_spill]] %s2731_s1 }
   0x3   :  { %2758 = sst [smem:[#allocation10_spill]] %s2732_s2 }
   0x4   :  { %2759 = sst [smem:[#allocation11_spill]] %s2733_s3 }
   0x5   :  { %2760 = sst [smem:[#allocation12_spill]] %s2734_s4 }
   0x6   :  { %2761 = sst [smem:[#allocation13_spill]] %s2735_s5 }
   0x7   :  { %2762 = sst [smem:[#allocation14_spill]] %s2736_s6 }
   0x8   :  { %28 = vsyncpa [#allocation3], 0  ;;  %s2763_s29 = sld [smem:[#allocation10_spill]]  ;;  %s2764_s25 = sld [smem:[#allocation8_spill]] }
   0xe   :  { %v1965_v0 = vld [vmem:[%s2763_s29 + $0x40] sm:$0xff]   ;;  %v1969_v4 = vld [vmem:[%s2763_s29 + $0x48] sm:$0xff]   ;;  %v1973_v8 = vld [vmem:[%s2763_s29 + $0x50] sm:$0xff]  }
   0xf   :  { %v1966_v1 = vld [vmem:[%s2763_s29 + $0xc0] sm:$0xff]   ;;  %1703 = vmatprep.subr.bf16.mxu0 %v1965_v0  ;;  %v1970_v5 = vld [vmem:[%s2763_s29 + $0xc8] sm:$0xff]   ;;  %v1974_v9 = vld [vmem:[%s2763_s29 + $0xd0] sm:$0xff]  }
  0x10   :  { %v1967_v2 = vld [vmem:[%s2763_s29] sm:$0xff]   ;;  %1725 = vmatprep.subr.bf16.mxu1 %v1966_v1  ;;  %v1971_v6 = vld [vmem:[%s2763_s29 + $0x8] sm:$0xff]   ;;  %v1975_v10 = vld [vmem:[%s2763_s29 + $0x10] sm:$0xff]  }
  0x11   :  { %v1968_v3 = vld [vmem:[%s2763_s29 + $0x80] sm:$0xff]   ;;  %1704 = vmatpush3.bf16.msra.mxu0 %v1967_v2  ;;  %v1972_v7 = vld [vmem:[%s2763_s29 + $0x88] sm:$0xff]   ;;  %v1976_v11 = vld [vmem:[%s2763_s29 + $0x90] sm:$0xff]  }
  0x12   :  { %1726 = vmatpush3.bf16.msra.mxu1 %v1968_v3  ;;  %1705 = vmatprep.subr.bf16.mxu0 %v1969_v4  ;;  %v1977_v12 = vld [vmem:[%s2763_s29 + $0x58] sm:$0xff]   ;;  %v1981_v16 = vld [vmem:[%s2763_s29 + $0x60] sm:$0xff]   ;;  %v1985_v20 = vld [vmem:[%s2763_s29 + $0x68] sm:$0xff]  }
  0x13   :  { %1727 = vmatprep.subr.bf16.mxu1 %v1970_v5  ;;  %v1978_v13 = vld [vmem:[%s2763_s29 + $0xd8] sm:$0xff]   ;;  %v1982_v17 = vld [vmem:[%s2763_s29 + $0xe0] sm:$0xff]   ;;  %v1986_v21 = vld [vmem:[%s2763_s29 + $0xe8] sm:$0xff]  }
  0x14   :  { %v1979_v14 = vld [vmem:[%s2763_s29 + $0x18] sm:$0xff]   ;;  %v1983_v18 = vld [vmem:[%s2763_s29 + $0x20] sm:$0xff]   ;;  %v1987_v22 = vld [vmem:[%s2763_s29 + $0x28] sm:$0xff]  }
  0x15   :  { %1706 = vmatpush3.bf16.msra.mxu0 %v1971_v6  ;;  %v1980_v15 = vld [vmem:[%s2763_s29 + $0x98] sm:$0xff]   ;;  %v1984_v19 = vld [vmem:[%s2763_s29 + $0xa0] sm:$0xff]   ;;  %v1988_v23 = vld [vmem:[%s2763_s29 + $0xa8] sm:$0xff]  }
  0x16   :  { %1728 = vmatpush3.bf16.msra.mxu1 %v1972_v7  ;;  %1707 = vmatprep.subr.bf16.mxu0 %v1973_v8  ;;  %v1989_v24 = vld [vmem:[%s2763_s29 + $0x70] sm:$0xff]   ;;  %v1993_v28 = vld [vmem:[%s2763_s29 + $0x78] sm:$0xff]   ;;  %v74_v32 = vld [vmem:[%s2764_s25 + $0x8] sm:$0xff] }
  0x17   :  { %1729 = vmatprep.subr.bf16.mxu1 %v1974_v9  ;;  %v1990_v25 = vld [vmem:[%s2763_s29 + $0xf0] sm:$0xff]   ;;  %v1994_v29 = vld [vmem:[%s2763_s29 + $0xf8] sm:$0xff]   ;;  %v73_v34 = vld [vmem:[%s2764_s25] sm:$0xff]  ;;  %v82_v35 = vpack.c.bf16 %v74_v32, %v74_v32 }
  0x18   :  { %v1991_v26 = vld [vmem:[%s2763_s29 + $0x30] sm:$0xff]   ;;  %v1995_v30 = vld [vmem:[%s2763_s29 + $0x38] sm:$0xff]   ;;  %v81_v37 = vpack.c.bf16 %v73_v34, %v73_v34  ;;  %v1997_v40 = vld [vmem:[%s2763_s29 + $0x140] sm:$0xff]  }
  0x19   :  { %1708 = vmatpush3.bf16.msra.mxu0 %v1975_v10  ;;  %v1992_v27 = vld [vmem:[%s2763_s29 + $0xb0] sm:$0xff]   ;;  %v1996_v31 = vld [vmem:[%s2763_s29 + $0xb8] sm:$0xff]   ;;  %640 = vmatprep.mubr.bf16.mxu0 %v82_v35  ;;  %v1998_v41 = vld [vmem:[%s2763_s29 + $0x1c0] sm:$0xff]  }
  0x1a   :  { %1730 = vmatpush3.bf16.msra.mxu1 %v1976_v11  ;;  %1709 = vmatprep.subr.bf16.mxu0 %v1977_v12  ;;  %v76_v33 = vld [vmem:[%s2764_s25 + $0x18] sm:$0xff]  ;;  %v75_v38 = vld [vmem:[%s2764_s25 + $0x10] sm:$0xff]  ;;  %v1999_v42 = vld [vmem:[%s2763_s29 + $0x100] sm:$0xff]  }
  0x1b   :  { %1731 = vmatprep.subr.bf16.mxu1 %v1978_v13  ;;  %v84_v36 = vpack.c.bf16 %v76_v33, %v76_v33  ;;  %v83_v39 = vpack.c.bf16 %v75_v38, %v75_v38  ;;  %v2000_v43 = vld [vmem:[%s2763_s29 + $0x180] sm:$0xff]   ;;  %v2001_v44 = vld [vmem:[%s2763_s29 + $0x148] sm:$0xff]   ;;  %v2005_v48 = vld [vmem:[%s2763_s29 + $0x150] sm:$0xff]  }
  0x1c   :  { %v2002_v45 = vld [vmem:[%s2763_s29 + $0x1c8] sm:$0xff]   ;;  %v2006_v49 = vld [vmem:[%s2763_s29 + $0x1d0] sm:$0xff]   ;;  %v2009_v52 = vld [vmem:[%s2763_s29 + $0x158] sm:$0xff]  }
  0x1d   :  { %1710 = vmatpush3.bf16.msra.mxu0 %v1979_v14  ;;  %680 = vmatprep.mubr.bf16.mxu1 %v84_v36  ;;  %v2003_v46 = vld [vmem:[%s2763_s29 + $0x108] sm:$0xff]   ;;  %v2007_v50 = vld [vmem:[%s2763_s29 + $0x110] sm:$0xff]   ;;  %v2010_v53 = vld [vmem:[%s2763_s29 + $0x1d8] sm:$0xff]  }
  0x1e   :  { %1732 = vmatpush3.bf16.msra.mxu1 %v1980_v15  ;;  %1711 = vmatprep.subr.bf16.mxu0 %v1981_v16  ;;  %v2004_v47 = vld [vmem:[%s2763_s29 + $0x188] sm:$0xff]   ;;  %v2008_v51 = vld [vmem:[%s2763_s29 + $0x190] sm:$0xff]   ;;  %v2011_v54 = vld [vmem:[%s2763_s29 + $0x118] sm:$0xff]  }
  0x1f   :  { %1733 = vmatprep.subr.bf16.mxu1 %v1982_v17  ;;  %v2012_v55 = vld [vmem:[%s2763_s29 + $0x198] sm:$0xff]   ;;  %v2013_v56 = vld [vmem:[%s2763_s29 + $0x160] sm:$0xff]   ;;  %v2017_v60 = vld [vmem:[%s2763_s29 + $0x168] sm:$0xff]  }
  0x20   :  { %v2014_v57 = vld [vmem:[%s2763_s29 + $0x1e0] sm:$0xff]   ;;  %v2018_v61 = vld [vmem:[%s2763_s29 + $0x1e8] sm:$0xff]   ;;  %v2021_v0 = vld [vmem:[%s2763_s29 + $0x170] sm:$0xff]  }
  0x21   :  { %1712 = vmatpush3.bf16.msra.mxu0 %v1983_v18  ;;  %v2015_v58 = vld [vmem:[%s2763_s29 + $0x120] sm:$0xff]   ;;  %v2019_v62 = vld [vmem:[%s2763_s29 + $0x128] sm:$0xff]   ;;  %v2022_v1 = vld [vmem:[%s2763_s29 + $0x1f0] sm:$0xff]  }
  0x22   :  { %1734 = vmatpush3.bf16.msra.mxu1 %v1984_v19  ;;  %1713 = vmatprep.subr.bf16.mxu0 %v1985_v20  ;;  %v2016_v59 = vld [vmem:[%s2763_s29 + $0x1a0] sm:$0xff]   ;;  %v2020_v63 = vld [vmem:[%s2763_s29 + $0x1a8] sm:$0xff]   ;;  %v2023_v2 = vld [vmem:[%s2763_s29 + $0x130] sm:$0xff]  }
  0x23   :  { %1735 = vmatprep.subr.bf16.mxu1 %v1986_v21  ;;  %v2024_v3 = vld [vmem:[%s2763_s29 + $0x1b0] sm:$0xff]   ;;  %v2025_v4 = vld [vmem:[%s2763_s29 + $0x178] sm:$0xff]   ;;  %v78_v8 = vld [vmem:[%s2764_s25 + $0x28] sm:$0xff] }
  0x24   :  { %v2026_v5 = vld [vmem:[%s2763_s29 + $0x1f8] sm:$0xff]   ;;  %v86_v10 = vpack.c.bf16 %v78_v8, %v78_v8  ;;  %v77_v12 = vld [vmem:[%s2764_s25 + $0x20] sm:$0xff]  ;;  %v79_v13 = vld [vmem:[%s2764_s25 + $0x30] sm:$0xff] }
  0x25   :  { %1714 = vmatpush3.bf16.msra.mxu0 %v1987_v22  ;;  %v2027_v6 = vld [vmem:[%s2763_s29 + $0x138] sm:$0xff]   ;;  %v85_v14 = vpack.c.bf16 %v77_v12, %v77_v12  ;;  %v87_v15 = vpack.c.bf16 %v79_v13, %v79_v13 }
  0x26   :  { %1736 = vmatpush3.bf16.msra.mxu1 %v1988_v23  ;;  %1715 = vmatprep.subr.bf16.mxu0 %v1989_v24  ;;  %v2028_v7 = vld [vmem:[%s2763_s29 + $0x1b8] sm:$0xff]  }
  0x27   :  { %1737 = vmatprep.subr.bf16.mxu1 %v1990_v25  ;;  %v80_v9 = vld [vmem:[%s2764_s25 + $0x38] sm:$0xff] }
  0x28   :  { %v88_v11 = vpack.c.bf16 %v80_v9, %v80_v9 }
  0x29   :  { %1716 = vmatpush3.bf16.msra.mxu0 %v1991_v26 }
  0x2a   :  { %1738 = vmatpush3.bf16.msra.mxu1 %v1992_v27  ;;  %1717 = vmatprep.subr.bf16.mxu0 %v1993_v28 }
  0x2b   :  { %1739 = vmatprep.subr.bf16.mxu1 %v1994_v29 }
  0x2d   :  { %1718 = vmatpush3.bf16.msra.mxu0 %v1995_v30 }
  0x2e   :  { %1740 = vmatpush3.bf16.msra.mxu1 %v1996_v31  ;;  %1747 = vmatprep.subr.bf16.mxu0 %v1997_v40 }
  0x2f   :  { %1769 = vmatprep.subr.bf16.mxu1 %v1998_v41 }
  0x30   :  { %641 = vmatmul.mubr.bf16.vlgmr.msra.gmra.mrb[0].mxu0 %v81_v37 }
  0x31   :  { %681 = vmatmul.mubr.bf16.vlgmr.msra.gmra.mrb[0].mxu1 %v83_v39  ;;  %1748 = vmatpush3.bf16.msra.mxu0 %v1999_v42 }
  0x32   :  { %1770 = vmatpush3.bf16.msra.mxu1 %v2000_v43  ;;  %1749 = vmatprep.subr.bf16.mxu0 %v2001_v44 }
  0x33   :  { %1771 = vmatprep.subr.bf16.mxu1 %v2002_v45  ;;  %720 = vmatprep.mubr.bf16.mxu0 %v86_v10 }
  0x34   :  { %760 = vmatprep.mubr.bf16.mxu1 %v88_v11 }
  0x35   :  { %1750 = vmatpush3.bf16.msra.mxu0 %v2003_v46 }
  0x36   :  { %1772 = vmatpush3.bf16.msra.mxu1 %v2004_v47  ;;  %1751 = vmatprep.subr.bf16.mxu0 %v2005_v48 }
  0x37   :  { %1773 = vmatprep.subr.bf16.mxu1 %v2006_v49 }
  0x39   :  { %1752 = vmatpush3.bf16.msra.mxu0 %v2007_v50 }
  0x3a   :  { %1774 = vmatpush3.bf16.msra.mxu1 %v2008_v51  ;;  %1753 = vmatprep.subr.bf16.mxu0 %v2009_v52 }
  0x3b   :  { %1775 = vmatprep.subr.bf16.mxu1 %v2010_v53 }
  0x3d   :  { %1754 = vmatpush3.bf16.msra.mxu0 %v2011_v54 }
  0x3e   :  { %1776 = vmatpush3.bf16.msra.mxu1 %v2012_v55  ;;  %1755 = vmatprep.subr.bf16.mxu0 %v2013_v56 }
  0x3f   :  { %1777 = vmatprep.subr.bf16.mxu1 %v2014_v57 }
  0x41   :  { %1756 = vmatpush3.bf16.msra.mxu0 %v2015_v58 }
  0x42   :  { %1778 = vmatpush3.bf16.msra.mxu1 %v2016_v59  ;;  %1757 = vmatprep.subr.bf16.mxu0 %v2017_v60 }
  0x43   :  { %1779 = vmatprep.subr.bf16.mxu1 %v2018_v61 }
  0x45   :  { %1758 = vmatpush3.bf16.msra.mxu0 %v2019_v62 }
  0x46   :  { %1780 = vmatpush3.bf16.msra.mxu1 %v2020_v63  ;;  %1759 = vmatprep.subr.bf16.mxu0 %v2021_v0 }
  0x47   :  { %1781 = vmatprep.subr.bf16.mxu1 %v2022_v1 }
  0x49   :  { %1760 = vmatpush3.bf16.msra.mxu0 %v2023_v2 }
  0x4a   :  { %1782 = vmatpush3.bf16.msra.mxu1 %v2024_v3  ;;  %1761 = vmatprep.subr.bf16.mxu0 %v2025_v4 }
  0x4b   :  { %1783 = vmatprep.subr.bf16.mxu1 %v2026_v5 }
  0x4d   :  { %1762 = vmatpush3.bf16.msra.mxu0 %v2027_v6 }
  0x4e   :  { %1784 = vmatpush3.bf16.msra.mxu1 %v2028_v7 }
  0x50   :  { %721 = vmatmul.mubr.bf16.vlgmr.msra.gmra.mrb[4].mxu0 %v85_v14 }
  0x51   :  { %761 = vmatmul.mubr.bf16.vlgmr.msra.gmra.mrb[4].mxu1 %v87_v15 }
  0x52   :  { %29 = vsyncpa [#allocation5], 0  ;;  %s2765_s2 = sld [smem:[#allocation12_spill]]  ;;  %v2130_v17 = vmov 0.0   ;;  %vm2131_vm0 = vmmov 0   ;;  %v2038_v25 = vld [vmem:[%s2738_s8] sm:$0xff]  }
  0x53   :  { %1843 = vmatprep.subr.bf16.mxu0 %v2130_v17  ;;  %1869 = vmatprep.subr.bf16.mxu1 %v2130_v17  ;;  %v2039_v26 = vld [vmem:[%s2738_s8 + $0x8] sm:$0xff]   ;;  %v2040_v27 = vld [vmem:[%s2738_s8 + $0x10] sm:$0xff]   ;;  %v2041_v28 = vld [vmem:[%s2738_s8 + $0x18] sm:$0xff]   ;;  %s2766_s5 = sld [smem:[#allocation11_spill]]  ;;  %s2767_s29 = sld [smem:[#allocation14_spill]]  ;;  %vm898_vm1 = vcmask 130048  }
  0x54   :  { %1859 = vmatprep.mubr.msk.bf16.mxu0 %vm2131_vm0, %v2130_v17  ;;  %1885 = vmatprep.mubr.msk.bf16.mxu1 %vm2131_vm0, %v2130_v17  ;;  %s2768_s25 = sld [smem:[#allocation9_spill]]  ;;  %v2042_v59 = vld [vmem:[%s2738_s8 + $0x20] sm:$0xff]   ;;  %v2043_v60 = vld [vmem:[%s2738_s8 + $0x28] sm:$0xff]   ;;  %v2044_v61 = vld [vmem:[%s2738_s8 + $0x30] sm:$0xff]   ;;  %s2769_s23 = sld [smem:[#allocation13_spill]]  ;;  %vm1316_vm2 = vcmask 523264  }
  0x55   :  { %1870 = vmatpush3.bf16.msra.mxu1 %v2038_v25  ;;  %v2045_v62 = vld [vmem:[%s2738_s8 + $0x38] sm:$0xff]   ;;  %v2046_v63 = vld [vmem:[%s2740_s10] sm:$0xff]   ;;  %v2047_v0 = vld [vmem:[%s2740_s10 + $0x8] sm:$0xff]  }
  0x56   :  { %1871 = vmatprep.subr.bf16.mxu1 %v2130_v17  ;;  %v2048_v1 = vld [vmem:[%s2740_s10 + $0x10] sm:$0xff]   ;;  %v2049_v2 = vld [vmem:[%s2740_s10 + $0x18] sm:$0xff]   ;;  %v2050_v3 = vld [vmem:[%s2740_s10 + $0x20] sm:$0xff]  }
  0x57   :  { %v2051_v4 = vld [vmem:[%s2740_s10 + $0x28] sm:$0xff]   ;;  %v1654_v13 = vld [vmem:[%s2737_s7] ss:$0 sm:$0xff] }
  0x58   :  { %v2029_v16 = vld [vmem:[%s2765_s2] sm:$0xff]   ;;  %v2030_v18 = vld [vmem:[%s2765_s2 + $0x8] sm:$0xff]   ;;  %v2031_v19 = vld [vmem:[%s2765_s2 + $0x10] sm:$0xff]  }
  0x59   :  { %1844 = vmatpush3.bf16.msra.mxu0 %v2029_v16  ;;  %v2032_v20 = vld [vmem:[%s2765_s2 + $0x18] sm:$0xff]   ;;  %v2033_v21 = vld [vmem:[%s2765_s2 + $0x20] sm:$0xff]   ;;  %v2034_v22 = vld [vmem:[%s2765_s2 + $0x28] sm:$0xff]   ;;  %1872 = vmatpush3.bf16.msra.mxu1 %v2039_v26 }
  0x5a   :  { %1845 = vmatprep.subr.bf16.mxu0 %v2130_v17  ;;  %v2035_v23 = vld [vmem:[%s2765_s2 + $0x30] sm:$0xff]   ;;  %v2036_v24 = vld [vmem:[%s2765_s2 + $0x38] sm:$0xff]   ;;  %1873 = vmatprep.subr.bf16.mxu1 %v2130_v17  ;;  %v1580_v31 = vld [vmem:[%s2766_s5] ss:$0 sm:$0xff] }
  0x5b   :  { %v2037_v55 = vld [vmem:[%s2767_s29] sm:$0xff]  }
  0x5c   :  { %v881_v57 = vld [vmem:[%s2768_s25] sm:$0xff] }
  0x5d   :  { %1846 = vmatpush3.bf16.msra.mxu0 %v2030_v18  ;;  %1874 = vmatpush3.bf16.msra.mxu1 %v2040_v27  ;;  %v882_v58 = vpack.c.bf16 %v881_v57, %v881_v57  ;;  %v1645_v5 = vld [vmem:[%s2769_s23] ss:$0 sm:$0xff] }
  0x5e   :  { %1847 = vmatprep.subr.bf16.mxu0 %v2130_v17  ;;  %1875 = vmatprep.subr.bf16.mxu1 %v2130_v17 }
  0x61   :  { %1848 = vmatpush3.bf16.msra.mxu0 %v2031_v19  ;;  %1876 = vmatpush3.bf16.msra.mxu1 %v2041_v28 }
  0x62   :  { %1849 = vmatprep.subr.bf16.mxu0 %v2130_v17  ;;  %1877 = vmatprep.subr.bf16.mxu1 %v2130_v17 }
  0x65   :  { %1850 = vmatpush3.bf16.msra.mxu0 %v2032_v20  ;;  %1878 = vmatpush3.bf16.msra.mxu1 %v2042_v59 }
  0x66   :  { %1851 = vmatprep.subr.bf16.mxu0 %v2130_v17  ;;  %1879 = vmatprep.subr.bf16.mxu1 %v2130_v17 }
  0x69   :  { %1852 = vmatpush3.bf16.msra.mxu0 %v2033_v21  ;;  %1880 = vmatpush3.bf16.msra.mxu1 %v2043_v60  ;;  %v2061_v60 = vld [vmem:[%s2742_s12 + $0x38] sm:$0xff]  }
  0x6a   :  { %1853 = vmatprep.subr.bf16.mxu0 %v2130_v17  ;;  %1881 = vmatprep.subr.bf16.mxu1 %v2130_v17 }
  0x6d   :  { %1854 = vmatpush3.bf16.msra.mxu0 %v2034_v22  ;;  %1882 = vmatpush3.bf16.msra.mxu1 %v2044_v61  ;;  %v1666_v61 = vld [vmem:[%s2741_s11] ss:$0 sm:$0xff]  ;;  %s2132_s11 = smov [#allocation2]  }
  0x6e   :  { %1855 = vmatprep.subr.bf16.mxu0 %v2130_v17  ;;  %1883 = vmatprep.subr.bf16.mxu1 %v2130_v17  ;;  %s1558_s3 = sshll.u32 %s2132_s11, 4  ;;  %s1559_s3 = int_to_ptr.vmem [resolvable:$true] %s1558_s3 }
  0x6f   :  { %s2082_s28 = scalar_lea.vmem %s1559_s3, 256  ;;  %p2087_p1 = scmp.lt.s32.totalorder %s1559_s3, %s1559_s3 }
  0x70   :  { %p2083_p0 = scmp.ne.s32.totalorder %s1559_s3, %s2082_s28  ;;  %p2088_p2 = scmp.lt.s32.totalorder %s2082_s28, %s2082_s28 }
  0x71   :  { %1856 = vmatpush3.bf16.msra.mxu0 %v2035_v23  ;;  %1884 = vmatpush3.bf16.msra.mxu1 %v2045_v62 }
  0x72   :  { %1857 = vmatprep.subr.bf16.mxu0 %v2130_v17  ;;  %1909 = vmatprep.subr.bf16.mxu1 %v2130_v17  ;;  %p2089_p3 = por %p2088_p2, %p2087_p1 }
  0x74   :  { %p2090_p4 = pnand %p2089_p3, %p2083_p0 }
  0x75   :  { %1858 = vmatpush3.bf16.msra.mxu0 %v2036_v24 }
  0x76   :  { %1863 = vmatprep.subr.bf16.mxu0 %v2130_v17 }
 0x103   :  { %v1719_v29 = vpop.f32.mrb[0].mxu0 }
 0x104   :  { %v1741_v30 = vpop.f32.mrb[0].mxu1  ;;  %v1720_v32 = vpop.f32.mrb[1].mxu0 }
 0x105   :  { %v1742_v33 = vpop.f32.mrb[1].mxu1  ;;  %v1721_v34 = vadd.f32 %v1720_v32, %v1719_v29  ;;  %v1722_v36 = vpop.f32.mrb[2].mxu0 }
 0x106   :  { %v1743_v35 = vadd.f32 %v1742_v33, %v1741_v30  ;;  %v1744_v37 = vpop.f32.mrb[2].mxu1  ;;  %v1723_v38 = vpop.f32.mrb[3].mxu0 }
 0x107   :  { %v1745_v39 = vpop.f32.mrb[3].mxu1  ;;  %v643_v40 = vadd.f32 %v1721_v34, %v1580_v31  ;;  %v1684_v38 = vld [vmem:[%s2744_s14] ss:$0 sm:$0xff] }
 0x109   :  { %v683_v41 = vadd.f32 %v1743_v35, %v643_v40  ;;  %v1685_v40 = vld [vmem:[%s2745_s15] ss:$0 sm:$0xff] }
 0x123   :  { %v1763_v42 = vpop.f32.mrb[4].mxu0 }
 0x124   :  { %v1785_v43 = vpop.f32.mrb[4].mxu1  ;;  %v1764_v44 = vpop.f32.mrb[5].mxu0 }
 0x125   :  { %v1765_v45 = vadd.f32 %v1764_v44, %v1763_v42  ;;  %v1786_v46 = vpop.f32.mrb[5].mxu1  ;;  %v1766_v47 = vpop.f32.mrb[6].mxu0  ;;  %v2053_v44 = vld [vmem:[%s2740_s10 + $0x38] sm:$0xff]  }
 0x126   :  { %v1787_v48 = vadd.f32 %v1786_v46, %v1785_v43  ;;  %v1788_v49 = vpop.f32.mrb[6].mxu1  ;;  %v1767_v50 = vpop.f32.mrb[7].mxu0  ;;  %v2052_v43 = vld [vmem:[%s2740_s10 + $0x30] sm:$0xff]   ;;  %v2055_v46 = vld [vmem:[%s2742_s12 + $0x8] sm:$0xff]  }
 0x127   :  { %v723_v51 = vadd.f32 %v1765_v45, %v683_v41  ;;  %v1789_v52 = vpop.f32.mrb[7].mxu1  ;;  %v2054_v45 = vld [vmem:[%s2742_s12] sm:$0xff]   ;;  %v2056_v47 = vld [vmem:[%s2742_s12 + $0x10] sm:$0xff]   ;;  %v2059_v50 = vld [vmem:[%s2742_s12 + $0x28] sm:$0xff]  }
 0x128   :  { %v2058_v49 = vld [vmem:[%s2742_s12 + $0x20] sm:$0xff]  }
 0x129   :  { %v763_v53 = vadd.f32 %v1787_v48, %v723_v51  ;;  %v2057_v48 = vld [vmem:[%s2742_s12 + $0x18] sm:$0xff]   ;;  %v2060_v51 = vld [vmem:[%s2742_s12 + $0x30] sm:$0xff]   ;;  %v1657_v52 = vld [vmem:[%s2739_s9] ss:$0 sm:$0xff] }
 0x12b   :  { %v768_v54 = vmax.f32 %v763_v53, 0.0 }
 0x12d   :  { %v769_v56 = vpack.c.bf16 %v768_v54, %v768_v54 }
 0x12f   :  { %1860 = vmatmul.mubr.bf16.vlgmr.msra.gmra.mrb[8].mxu0 %v769_v56 }
 0x130   :  { %1864 = vmatpush3.bf16.msra.mxu0 %v2037_v55  ;;  %1865 = vmatprep.mubr.msk.bf16.mxu0 %vm2131_vm0, %v2130_v17 }
 0x131   :  { %1889 = vmatprep.subr.bf16.mxu0 %v2130_v17 }
 0x137   :  { %1866 = vmatmul.mubr.msk.bf16.vlgmr.msra.gmra.mrb[12].mxu0 %vm898_vm1, %v882_v58 }
 0x138   :  { %1905 = vmatprep.mubr.msk.bf16.mxu0 %vm2131_vm0, %v2130_v17  ;;  %1890 = vmatpush3.bf16.msra.mxu0 %v2046_v63 }
 0x139   :  { %1891 = vmatprep.subr.bf16.mxu0 %v2130_v17 }
 0x13c   :  { %1892 = vmatpush3.bf16.msra.mxu0 %v2047_v0 }
 0x13d   :  { %1893 = vmatprep.subr.bf16.mxu0 %v2130_v17 }
 0x140   :  { %1894 = vmatpush3.bf16.msra.mxu0 %v2048_v1 }
 0x141   :  { %1895 = vmatprep.subr.bf16.mxu0 %v2130_v17 }
 0x144   :  { %1896 = vmatpush3.bf16.msra.mxu0 %v2049_v2 }
 0x145   :  { %1897 = vmatprep.subr.bf16.mxu0 %v2130_v17 }
 0x148   :  { %1898 = vmatpush3.bf16.msra.mxu0 %v2050_v3 }
 0x149   :  { %1899 = vmatprep.subr.bf16.mxu0 %v2130_v17 }
 0x14c   :  { %1900 = vmatpush3.bf16.msra.mxu0 %v2051_v4  ;;  %v2062_v4 = vld [vmem:[%s2748_s18] sm:$0xff]  }
 0x14d   :  { %1901 = vmatprep.subr.bf16.mxu0 %v2130_v17 }
 0x150   :  { %1902 = vmatpush3.bf16.msra.mxu0 %v2052_v43 }
 0x151   :  { %1903 = vmatprep.subr.bf16.mxu0 %v2130_v17 }
 0x154   :  { %1904 = vmatpush3.bf16.msra.mxu0 %v2053_v44 }
 0x155   :  { %1929 = vmatprep.subr.bf16.mxu0 %v2130_v17 }
 0x202   :  { %v875_v6 = vpop.f32.mrb[8].mxu0 }
 0x203   :  { %v876_v7 = vadd.f32 %v1645_v5, %v875_v6  ;;  %v1861_v8 = vpop.f32.mrb[9].mxu0  ;;  %v2063_v6 = vld [vmem:[%s2748_s18 + $0x8] sm:$0xff]  }
 0x204   :  { %v878_v9 = vpop.f32.mrb[10].mxu0  ;;  %v2065_v8 = vld [vmem:[%s2748_s18 + $0x18] sm:$0xff]  }
 0x205   :  { %v1281_v10 = vrot.slane %v876_v7, 4  ;;  %v1862_v11 = vpop.f32.mrb[11].mxu0  ;;  %v2066_v9 = vld [vmem:[%s2748_s18 + $0x20] sm:$0xff]  }
 0x206   :  { %v2068_v11 = vld [vmem:[%s2748_s18 + $0x30] sm:$0xff]  }
 0x207   :  { %v1282_v12 = vadd.f32 %v1281_v10, %v876_v7  ;;  %v2067_v10 = vld [vmem:[%s2748_s18 + $0x28] sm:$0xff]  }
 0x209   :  { %v1283_v14 = vrot.slane %v1282_v12, 2 }
 0x20a   :  { %v936_v15 = vpop.f32.mrb[12].mxu0 }
 0x20b   :  { %v1284_v16 = vadd.f32 %v1283_v14, %v1282_v12  ;;  %v937_v18 = vadd.f32 %v1654_v13, %v936_v15  ;;  %v1867_v19 = vpop.f32.mrb[13].mxu0  ;;  %v2069_v12 = vld [vmem:[%s2748_s18 + $0x38] sm:$0xff]   ;;  %v2070_v14 = vld [vmem:[%s2749_s19] sm:$0xff]   ;;  %v2071_v15 = vld [vmem:[%s2749_s19 + $0x8] sm:$0xff]  }
 0x20c   :  { %v939_v20 = vpop.f32.mrb[14].mxu0  ;;  %v1675_v19 = vld [vmem:[%s2743_s13] ss:$0 sm:$0xff] }
 0x20d   :  { %v1285_v21 = vrot.slane %v1284_v16, 1  ;;  %v942_v22 = vmax.f32 %v937_v18, 0.0  ;;  %v1868_v23 = vpop.f32.mrb[15].mxu0  ;;  %v2073_v18 = vld [vmem:[%s2749_s19 + $0x18] sm:$0xff]  }
 0x20f   :  { %v1286_v24 = vadd.f32 %v1285_v21, %v1284_v16  ;;  %v943_v25 = vpack.c.bf16 %v942_v22, %v942_v22  ;;  %v2072_v16 = vld [vmem:[%s2749_s19 + $0x10] sm:$0xff]  }
 0x211   :  { %v1287_v26 = vmul.f32 0.125, %v1286_v24  ;;  %1886 = vmatmul.mubr.bf16.vlgmr.msra.gmra.mrb[8].mxu1 %v943_v25 }
 0x212   :  { %1925 = vmatprep.mubr.msk.bf16.mxu1 %vm2131_vm0, %v2130_v17  ;;  %1910 = vmatpush3.bf16.msra.mxu1 %v2054_v45 }
 0x213   :  { %v1288_v27 = vsub.f32 %v876_v7, %v1287_v26  ;;  %1911 = vmatprep.subr.bf16.mxu1 %v2130_v17  ;;  %v2064_v7 = vld [vmem:[%s2748_s18 + $0x10] sm:$0xff]  }
 0x215   :  { %v1289_v28 = vmul.f32 %v1288_v27, %v1288_v27 }
 0x216   :  { %1912 = vmatpush3.bf16.msra.mxu1 %v2055_v46 }
 0x217   :  { %v1290_v29 = vrot.slane %v1289_v28, 4  ;;  %1913 = vmatprep.subr.bf16.mxu1 %v2130_v17 }
 0x219   :  { %v1291_v30 = vadd.f32 %v1290_v29, %v1289_v28 }
 0x21a   :  { %1914 = vmatpush3.bf16.msra.mxu1 %v2056_v47 }
 0x21b   :  { %v1292_v31 = vrot.slane %v1291_v30, 2  ;;  %1915 = vmatprep.subr.bf16.mxu1 %v2130_v17 }
 0x21d   :  { %v1293_v32 = vadd.f32 %v1292_v31, %v1291_v30 }
 0x21e   :  { %1916 = vmatpush3.bf16.msra.mxu1 %v2057_v48  ;;  %v1686_v48 = vld [vmem:[%s2746_s16] ss:$0 sm:$0xff] }
 0x21f   :  { %v1294_v33 = vrot.slane %v1293_v32, 1  ;;  %1917 = vmatprep.subr.bf16.mxu1 %v2130_v17 }
 0x221   :  { %v1295_v34 = vadd.f32 %v1294_v33, %v1293_v32 }
 0x222   :  { %1918 = vmatpush3.bf16.msra.mxu1 %v2058_v49 }
 0x223   :  { %v1296_v35 = vmul.f32 0.125, %v1295_v34  ;;  %1919 = vmatprep.subr.bf16.mxu1 %v2130_v17 }
 0x225   :  { %v1297_v36 = vadd.f32 1e-05, %v1296_v35 }
 0x226   :  { %1920 = vmatpush3.bf16.msra.mxu1 %v2059_v50  ;;  %v1687_v50 = vld [vmem:[%s2747_s17] ss:$0 sm:$0xff] }
 0x227   :  { %2074 = vrsqrt.f32 %v1297_v36  ;;  %1921 = vmatprep.subr.bf16.mxu1 %v2130_v17 }
 0x22a   :  { %1922 = vmatpush3.bf16.msra.mxu1 %v2060_v51 }
 0x22b   :  { %1923 = vmatprep.subr.bf16.mxu1 %v2130_v17 }
 0x22e   :  { %1924 = vmatpush3.bf16.msra.mxu1 %v2061_v60 }
 0x22f   :  { %1941 = vmatprep.subr.bf16.mxu1 %v2130_v17 }
 0x231   :  { %v2075_v37 = vpop.eup %2074 }
 0x232   :  { %v1299_v39 = vmul.f32 %v2075_v37, %v1288_v27 }
 0x234   :  { %v1307_v41 = vmul.f32 %v1684_v38, %v1299_v39 }
 0x236   :  { %v2588_v42 = vadd.f32 %v1685_v40, %v1307_v41 }
 0x238   :  { %1354 = vst [vmem:[#allocation2] sm:$0xff] %v2588_v42  ;;  %v1356_v13 = vpack.c.bf16 %v2588_v42, %v2588_v42 }
 0x2e4   :  { %v1049_v53 = vpop.f32.mrb[8].mxu1 }
 0x2e5   :  { %v1050_v54 = vadd.f32 %v1657_v52, %v1049_v53  ;;  %v1887_v55 = vpop.f32.mrb[9].mxu1 }
 0x2e6   :  { %v1052_v56 = vpop.f32.mrb[10].mxu1 }
 0x2e7   :  { %v1055_v57 = vmax.f32 %v1050_v54, 0.0  ;;  %v1888_v58 = vpop.f32.mrb[11].mxu1 }
 0x2e9   :  { %v1056_v59 = vpack.c.bf16 %v1055_v57, %v1055_v57 }
 0x2eb   :  { %1906 = vmatmul.mubr.bf16.vlgmr.msra.gmra.mrb[16].mxu0 %v1056_v59 }
 0x2ec   :  { %1937 = vmatprep.mubr.msk.bf16.mxu0 %vm2131_vm0, %v2130_v17  ;;  %1930 = vmatpush3.bf16.msra.mxu0 %v2070_v14 }
 0x2ed   :  { %1931 = vmatprep.subr.bf16.mxu0 %v2130_v17 }
 0x2f0   :  { %1932 = vmatpush3.bf16.msra.mxu0 %v2071_v15 }
 0x2f1   :  { %1933 = vmatprep.subr.bf16.mxu0 %v2130_v17 }
 0x2f4   :  { %1934 = vmatpush3.bf16.msra.mxu0 %v2072_v16 }
 0x2f5   :  { %1935 = vmatprep.subr.bf16.mxu0 %v2130_v17 }
 0x2f8   :  { %1936 = vmatpush3.bf16.msra.mxu0 %v2073_v18 }
 0x3be   :  { %v1162_v62 = vpop.f32.mrb[16].mxu0 }
 0x3bf   :  { %v1163_v63 = vadd.f32 %v1666_v61, %v1162_v62  ;;  %v1907_v0 = vpop.f32.mrb[17].mxu0 }
 0x3c0   :  { %v1165_v1 = vpop.f32.mrb[18].mxu0 }
 0x3c1   :  { %v1168_v2 = vmax.f32 %v1163_v63, 0.0  ;;  %v1908_v3 = vpop.f32.mrb[19].mxu0 }
 0x3c3   :  { %v1169_v5 = vpack.c.bf16 %v1168_v2, %v1168_v2 }
 0x3c5   :  { %1926 = vmatmul.mubr.bf16.vlgmr.msra.gmra.mrb[12].mxu1 %v1169_v5 }
 0x3c6   :  { %1942 = vmatpush3.bf16.msra.mxu1 %v2062_v4  ;;  %1957 = vmatprep.mubr.msk.bf16.mxu1 %vm2131_vm0, %v2130_v17 }
 0x3c7   :  { %1943 = vmatprep.subr.bf16.mxu1 %v2130_v17 }
 0x3ca   :  { %1944 = vmatpush3.bf16.msra.mxu1 %v2063_v6 }
 0x3cb   :  { %1945 = vmatprep.subr.bf16.mxu1 %v2130_v17 }
 0x3ce   :  { %1946 = vmatpush3.bf16.msra.mxu1 %v2064_v7 }
 0x3cf   :  { %1947 = vmatprep.subr.bf16.mxu1 %v2130_v17 }
 0x3d2   :  { %1948 = vmatpush3.bf16.msra.mxu1 %v2065_v8 }
 0x3d3   :  { %1949 = vmatprep.subr.bf16.mxu1 %v2130_v17 }
 0x3d6   :  { %1950 = vmatpush3.bf16.msra.mxu1 %v2066_v9 }
 0x3d7   :  { %1951 = vmatprep.subr.bf16.mxu1 %v2130_v17 }
 0x3da   :  { %1952 = vmatpush3.bf16.msra.mxu1 %v2067_v10 }
 0x3db   :  { %1953 = vmatprep.subr.bf16.mxu1 %v2130_v17 }
 0x3de   :  { %1954 = vmatpush3.bf16.msra.mxu1 %v2068_v11 }
 0x3df   :  { %1955 = vmatprep.subr.bf16.mxu1 %v2130_v17 }
 0x3e2   :  { %1956 = vmatpush3.bf16.msra.mxu1 %v2069_v12 }
 0x3e5   :  { %1958 = vmatmul.mubr.bf16.vlgmr.msra.gmra.mrb[16].mxu1 %v1356_v13 }
 0x498   :  { %v1275_v20 = vpop.f32.mrb[12].mxu1 }
 0x499   :  { %v1276_v21 = vadd.f32 %v1675_v19, %v1275_v20  ;;  %v1927_v22 = vpop.f32.mrb[13].mxu1 }
 0x49a   :  { %v1278_v23 = vpop.f32.mrb[14].mxu1 }
 0x49b   :  { %v1317_v24 = vsel %vm1316_vm2, %v1276_v21, 0.0  ;;  %v1928_v25 = vpop.f32.mrb[15].mxu1 }
 0x49c   :  { %v1318_v26 = vrot.slane %v1317_v24, 4 }
 0x49e   :  { %v1319_v27 = vadd.f32 %v1318_v26, %v1317_v24 }
 0x4a0   :  { %v1320_v17 = vrot.slane %v1319_v27, 2 }
 0x4a2   :  { %v1321_v28 = vadd.f32 %v1320_v17, %v1319_v27 }
 0x4a4   :  { %v1322_v29 = vrot.slane %v1321_v28, 1 }
 0x4a6   :  { %v1323_v30 = vadd.f32 %v1322_v29, %v1321_v28 }
 0x4a8   :  { %v1324_v31 = vmul.f32 0.125, %v1323_v30 }
 0x4aa   :  { %v1325_v32 = vsub.f32 %v1276_v21, %v1324_v31 }
 0x4ac   :  { %v1326_v33 = vmul.f32 %v1325_v32, %v1325_v32 }
 0x4ae   :  { %v1327_v34 = vsel %vm1316_vm2, %v1326_v33, 0.0 }
 0x4af   :  { %v1328_v35 = vrot.slane %v1327_v34, 4 }
 0x4b1   :  { %v1329_v36 = vadd.f32 %v1328_v35, %v1327_v34 }
 0x4b3   :  { %v1330_v37 = vrot.slane %v1329_v36, 2 }
 0x4b5   :  { %v1331_v38 = vadd.f32 %v1330_v37, %v1329_v36 }
 0x4b7   :  { %v1332_v39 = vrot.slane %v1331_v38, 1 }
 0x4b8   :  { %v1531_v40 = vpop.f32.mrb[16].mxu1 }
 0x4b9   :  { %v1333_v41 = vadd.f32 %v1332_v39, %v1331_v38  ;;  %v1959_v42 = vpop.f32.mrb[17].mxu1 }
 0x4ba   :  { %v1534_v43 = vpop.f32.mrb[18].mxu1 }
 0x4bb   :  { %v1334_v44 = vmul.f32 0.125, %v1333_v41  ;;  %v1960_v45 = vpop.f32.mrb[19].mxu1 }
 0x4bd   :  { %v1335_v46 = vadd.f32 1e-05, %v1334_v44 }
 0x4bf   :  { %2076 = vrsqrt.f32 %v1335_v46 }
 0x4c9   :  { %v2077_v47 = vpop.eup %2076 }
 0x4ca   :  { %v1337_v49 = vmul.f32 %v2077_v47, %v1325_v32 }
 0x4cc   :  { %v1345_v51 = vmul.f32 %v1686_v48, %v1337_v49 }
 0x4ce   :  { %v1353_v52 = vadd.f32 %v1687_v50, %v1345_v51 }
 0x4d0   :  { %v1373_v53 = vpack.c.bf16 %v1353_v52, %v1353_v52  ;;  %1355 = vst.msk [vmem:[#allocation2 + $0x8] sm:$0xff] %vm1316_vm2, %v1353_v52 }
 0x4d2   :  { %1938 = vmatmul.mubr.msk.bf16.vlgmr.msra.gmra.mrb[20].mxu0 %vm1316_vm2, %v1373_v53 }
 0x4d3   :  { %2093 = shalt.err (!%p2090_p4)
}
 0x4d4   :  { %s2094_s17 = scalar_lea.hbm %s2751_s21, 256 }
 0x4d5   :  { %p2095_p5 = scmp.ne.s32.totalorder %s2751_s21, %s2094_s17  ;;  %p2098_p6 = scmp.lt.u32.totalorder %s2094_s17, %s2751_s21 }
 0x4d7   :  { %p2100_p7 = pnand %p2098_p6, %p2095_p5 }
 0x4d9   :  { %2103 = shalt.err (!%p2100_p7)
}
 0x4da   :  { %1561 = dma.vmem_to_hbm [thread:$0]  %s1559_s3, 256, %s2751_s21, [#allocation3]   ;;  %v1701_v55 = vld [vmem:[%s2750_s20] ss:$0 sm:$0xff] }
 0x4db   :  { %s2133_s24 = smov [#allocation4]  }
 0x4dc   :  { %s1568_s6 = sshll.u32 %s2133_s24, 4  ;;  %s1569_s6 = int_to_ptr.vmem [resolvable:$true] %s1568_s6 }
 0x4dd   :  { %s2104_s21 = scalar_lea.vmem %s1569_s6, 128  ;;  %p2109_p9 = scmp.lt.s32.totalorder %s1569_s6, %s1569_s6 }
 0x4de   :  { %p2105_p8 = scmp.ne.s32.totalorder %s1569_s6, %s2104_s21  ;;  %p2110_p10 = scmp.lt.s32.totalorder %s2104_s21, %s2104_s21 }
 0x4e0   :  { %p2111_p11 = por %p2110_p10, %p2109_p9 }
 0x4e2   :  { %p2112_p12 = pnand %p2111_p11, %p2105_p8 }
 0x5a5   :  { %v1443_v54 = vpop.f32.mrb[20].mxu0 }
 0x5a6   :  { %v1532_v56 = vadd.f32 %v1531_v40, %v1443_v54  ;;  %v1939_v57 = vpop.f32.mrb[21].mxu0 }
 0x5a7   :  { %v1446_v58 = vpop.f32.mrb[22].mxu0 }
 0x5a8   :  { %v1544_v59 = vadd.f32 %v1701_v55, %v1532_v56  ;;  %v1940_v60 = vpop.f32.mrb[23].mxu0 }
 0x5aa   :  { %v1702_v61 = vmul.f32 -1.442695, %v1544_v59 }
 0x5ac   :  { %2078 = vpow2.f32 %v1702_v61 }
 0x5b6   :  { %v2079_v62 = vpop.eup %2078 }
 0x5b7   :  { %v1548_v63 = vadd.f32 1.0, %v2079_v62 }
 0x5b9   :  { %2080 = vrcp.f32 %v1548_v63 }
 0x5c3   :  { %v2081_v0 = vpop.eup %2080 }
 0x5c4   :  { %1551 = vst.msk [vmem:[#allocation4] sm:$0xff] %vm898_vm1, %v2081_v0 }
 0x5c5   :  { %2115 = shalt.err (!%p2112_p12)
}
 0x5c6   :  { %s2116_s26 = scalar_lea.hbm %s2752_s22, 128 }
 0x5c7   :  { %p2117_p13 = scmp.ne.s32.totalorder %s2752_s22, %s2116_s26  ;;  %p2120_p0 = scmp.lt.u32.totalorder %s2116_s26, %s2752_s22 }
 0x5c9   :  { %p2122_p1 = pnand %p2120_p0, %p2117_p13 }
 0x5cb   :  { %2125 = shalt.err (!%p2122_p1)
}
 0x5cc   :  { %1571 = dma.vmem_to_hbm [thread:$0]  %s1569_s6, 128, %s2752_s22, [#allocation5]  }
 0x5cd   :  { %2126 = dma.done.wait [#allocation3], 256  }
 0x5ce   :  { %2127 = vsyncadd [#allocation3], 4294967040 }
 0x5cf   :  { %2128 = dma.done.wait [#allocation5], 128  }
 0x5d0   :  { %2129 = vsyncadd [#allocation5], 4294967168 }
 0x5d1   :  { %1578 = vsyncpa [#allocation3], 1 }
 0x5d2   :  { %1579 = vsyncpa [#allocation5], 1 }

</bundles_post_ra>
